<compile_context>
chip_gen: v6e
topology: v6e:2x2x1
jax: 0.10.0
libtpu: 0.0.40
codegen_flags: <defaults>
</compile_context>

<pallas_src>
import functools

import jax
import jax.numpy as jnp
from jax.experimental import pallas as pl
from jax.experimental.pallas import tpu as pltpu

BN_EPS = 1e-5  # torch.nn.BatchNorm1d default eps


def _round_up(x, m):
    return ((x + m - 1) // m) * m


# --------------------------------------------------------------------------- #
# Pass 1: BatchNorm batch statistics of Linear1 output (sum / sum-of-squares). #
# --------------------------------------------------------------------------- #
def _bn_stats_kernel(s_ref, w1t_ref, b1_ref, sum_ref, sumsq_ref, *,
                     n_rows, block_n):
    i = pl.program_id(0)

    @pl.when(i == 0)
    def _():
        sum_ref[...] = jnp.zeros_like(sum_ref)
        sumsq_ref[...] = jnp.zeros_like(sumsq_ref)

    # Linear1: bf16 operands, f32 accumulation on the MXU.
    h = jnp.dot(s_ref[...], w1t_ref[...],
                preferred_element_type=jnp.float32) + b1_ref[...]

    # Mask padded batch rows so the full-batch BN statistics stay exact.
    row = jax.lax.broadcasted_iota(jnp.int32, h.shape, 0) + i * block_n
    h = jnp.where(row < n_rows, h, 0.0)

    sum_ref[...] += jnp.sum(h, axis=0, keepdims=True)
    sumsq_ref[...] += jnp.sum(h * h, axis=0, keepdims=True)


# --------------------------------------------------------------------------- #
# Pass 2: normalize -> MLP -> fc -> + onehot(y) @ Q^T   (one tile of rows).    #
# --------------------------------------------------------------------------- #
def _pred_kernel(s_ref, y_ref, w1t_ref, b1_ref, scale_ref, shift_ref,
                 w2t_ref, b2_ref, wfct_ref, bfc_ref, qt_ref, out_ref):
    # Linear1 (bf16 x bf16 -> f32) + BatchNorm folded into a single affine + ReLU.
    h = jnp.dot(s_ref[...], w1t_ref[...],
                preferred_element_type=jnp.float32) + b1_ref[...]
    h = jnp.maximum(h * scale_ref[...] + shift_ref[...], 0.0)

    # Linear2 + ReLU.
    f = jnp.maximum(
        jnp.dot(h.astype(jnp.bfloat16), w2t_ref[...],
                preferred_element_type=jnp.float32) + b2_ref[...], 0.0)

    # fc (classifier), lane-dense padded to C_pad columns.
    z = jnp.dot(f.astype(jnp.bfloat16), wfct_ref[...],
                preferred_element_type=jnp.float32) + bfc_ref[...]

    # correct_z:  sigma2[n, c] = Q[c, y_n]  ==  (onehot(y) @ Q^T)[n, c]
    # (ratio * 0.5 is pre-folded into qt in the wrapper; kept f32 so the
    #  row-selection matmul is exact).
    tn, c_pad = out_ref.shape
    iota_c = jax.lax.broadcasted_iota(jnp.int32, (tn, c_pad), 1)
    onehot = (y_ref[...] == iota_c).astype(jnp.float32)
    sigma2 = jnp.dot(onehot, qt_ref[...], preferred_element_type=jnp.float32)

    out_ref[...] = z + sigma2


# --------------------------------------------------------------------------- #
# Wrapper                                                                      #
# --------------------------------------------------------------------------- #
def pred_y_with_s(s, y, ratio, params, cov, *, block_n=256):
    """Pallas implementation of PredYWithS.forward (update_cov=False path)."""
    n, feat_dim = s.shape
    latent_dim = params["w1"].shape[0]
    num_classes = params["wfc"].shape[0]

    f32, bf16 = jnp.float32, jnp.bfloat16

    tn = _round_up(min(block_n, _round_up(n, 8)), 8)      # batch tile (mult. of 8)
    n_pad = _round_up(n, tn)
    nt = n_pad // tn
    c_pad = _round_up(num_classes, 128)                   # lane-dense output width

    # ---- host-side layout plumbing ----------------------------------------
    s_p = jnp.zeros((n_pad, feat_dim), bf16).at[:n].set(s.astype(bf16))
    y_p = jnp.zeros((n_pad, 1), jnp.int32).at[:n, 0].set(y.astype(jnp.int32))

    w1t = params["w1"].T.astype(bf16)                                  # (A, L)
    b1 = params["b1"].reshape(1, latent_dim).astype(f32)
    w2t = params["w2"].T.astype(bf16)                                  # (L, A)
    b2 = params["b2"].reshape(1, feat_dim).astype(f32)
    wfct = jnp.zeros((feat_dim, c_pad), bf16).at[:, :num_classes].set(
        params["wfc"].T.astype(bf16))                                  # (A, C_pad)
    bfc = jnp.zeros((1, c_pad), f32).at[:, :num_classes].set(
        params["bfc"].astype(f32))

    vmem_limit = 32 * 1024 * 1024  # far above actual footprint; safe on v5e..v7x

    # ---- pass 1: full-batch BN statistics of Linear1 output ----------------
    stats_kernel = functools.partial(_bn_stats_kernel, n_rows=n, block_n=tn)
    sum_h, sumsq_h = pl.pallas_call(
        stats_kernel,
        grid=(nt,),
        in_specs=[
            pl.BlockSpec((tn, feat_dim), lambda i: (i, 0)),            # s tile
            pl.BlockSpec((feat_dim, latent_dim), lambda i: (0, 0)),    # W1^T resident
            pl.BlockSpec((1, latent_dim), lambda i: (0, 0)),           # b1
        ],
        out_specs=[
            pl.BlockSpec((1, latent_dim), lambda i: (0, 0)),           # sum  (accum)
            pl.BlockSpec((1, latent_dim), lambda i: (0, 0)),           # sumsq(accum)
        ],
        out_shape=[
            jax.ShapeDtypeStruct((1, latent_dim), f32),
            jax.ShapeDtypeStruct((1, latent_dim), f32),
        ],
        compiler_params=pltpu.CompilerParams(
            dimension_semantics=("arbitrary",),       # sequential: accumulator
            vmem_limit_bytes=vmem_limit),
    )(s_p, w1t, b1)

    # Finalize BN (tiny (1, L) math): fold gamma/beta/mean/rstd into one affine.
    inv_n = 1.0 / float(n)
    mean = sum_h * inv_n
    var = jnp.maximum(sumsq_h * inv_n - mean * mean, 0.0)   # biased var (torch BN train)
    rstd = jax.lax.rsqrt(var + BN_EPS)
    gamma = params["gamma"].reshape(1, latent_dim).astype(f32)
    beta = params["beta"].reshape(1, latent_dim).astype(f32)
    bn_scale = gamma * rstd
    bn_shift = beta - mean * bn_scale

    # ---- batch-independent correct_z precompute (hoisted out of the kernel) --
    # Q[c, k] = (W_c - W_k) Cov_k (W_c - W_k)^T ; sigma2[n, c] = Q[c, y_n].
    w = params["wfc"].astype(f32)
    diff = w[:, None, :] - w[None, :, :]                               # (C, C, A)
    q = jnp.einsum("cka,kab,ckb->ck", diff, cov.astype(f32), diff)     # (C, C)
    qt = jnp.zeros((c_pad, c_pad), f32).at[:num_classes, :num_classes].set(
        (0.5 * ratio) * q.T)                                           # ratio folded in

    # ---- pass 2: fused normalize -> MLP -> fc -> +sigma2 --------------------
    flops = 2 * n_pad * (feat_dim * latent_dim + latent_dim * feat_dim
                         + feat_dim * c_pad + c_pad * c_pad)
    bytes_accessed = (s_p.size * 2 + y_p.size * 4 + w1t.size * 2 + w2t.size * 2
                      + wfct.size * 2 + qt.size * 4 + n_pad * c_pad * 4)

    out_pad = pl.pallas_call(
        _pred_kernel,
        grid=(nt,),
        in_specs=[
            pl.BlockSpec((tn, feat_dim), lambda i: (i, 0)),            # s tile
            pl.BlockSpec((tn, 1), lambda i: (i, 0)),                   # y tile
            pl.BlockSpec((feat_dim, latent_dim), lambda i: (0, 0)),    # W1^T
            pl.BlockSpec((1, latent_dim), lambda i: (0, 0)),           # b1
            pl.BlockSpec((1, latent_dim), lambda i: (0, 0)),           # bn scale
            pl.BlockSpec((1, latent_dim), lambda i: (0, 0)),           # bn shift
            pl.BlockSpec((latent_dim, feat_dim), lambda i: (0, 0)),    # W2^T
            pl.BlockSpec((1, feat_dim), lambda i: (0, 0)),             # b2
            pl.BlockSpec((feat_dim, c_pad), lambda i: (0, 0)),         # Wfc^T (padded)
            pl.BlockSpec((1, c_pad), lambda i: (0, 0)),                # bfc (padded)
            pl.BlockSpec((c_pad, c_pad), lambda i: (0, 0)),            # Q^T * 0.5*ratio
        ],
        out_specs=pl.BlockSpec((tn, c_pad), lambda i: (i, 0)),         # lane-dense
        out_shape=jax.ShapeDtypeStruct((n_pad, c_pad), f32),
        compiler_params=pltpu.CompilerParams(
            dimension_semantics=("parallel",),        # batch tiles independent
            vmem_limit_bytes=vmem_limit),
        cost_estimate=pl.CostEstimate(flops=flops, transcendentals=0,
                                      bytes_accessed=bytes_accessed),
    )(s_p, y_p, w1t, b1, bn_scale, bn_shift, w2t, b2, wfct, bfc, qt)

    return out_pad[:n, :num_classes]


# --------------------------------------------------------------------------- #
# Reference (pure JAX).  Mirrors the PyTorch math; matmul operands are cast to #
# bf16 exactly like the kernel (standard TPU MXU practice) so the check is     #
# tight; everything else is f32.                                               #
# --------------------------------------------------------------------------- #
def _reference(s, y, ratio, params, cov):
    bf16, f32 = jnp.bfloat16, jnp.float32
    h = jnp.dot(s.astype(bf16), params["w1"].T.astype(bf16),
                preferred_element_type=f32) + params["b1"]
    mean = jnp.mean(h, axis=0, keepdims=True)
    var = jnp.mean(h * h, axis=0, keepdims=True) - mean * mean   # biased, like torch BN
    h = (h - mean) * jax.lax.rsqrt(var + BN_EPS) * params["gamma"] + params["beta"]
    h = jnp.maximum(h, 0.0)
    f = jnp.maximum(
        jnp.dot(h.astype(bf16), params["w2"].T.astype(bf16),
                preferred_element_type=f32) + params["b2"], 0.0)
    z = jnp.dot(f.astype(bf16), params["wfc"].T.astype(bf16),
                preferred_element_type=f32) + params["bfc"]
    w = params["wfc"].astype(f32)
    diff = w[None, :, :] - w[y][:, None, :]                      # (N, C, A)
    sigma2 = jnp.einsum("nca,nab,ncb->nc", diff, cov[y], diff)
    return z + ratio * 0.5 * sigma2


if __name__ == "__main__":
    N, FEAT, CLASSES = 20, 32, 10            # N not a multiple of the 8-row tile
    LATENT = FEAT // 2

    key = jax.random.PRNGKey(0)
    ks = jax.random.split(key, 9)
    s = jax.random.normal(ks[0], (N, FEAT), jnp.float32)
    y = jax.random.randint(ks[1], (N,), 0, CLASSES, jnp.int32)

    params = dict(
        w1=jax.random.normal(ks[2], (LATENT, FEAT), jnp.float32) * 0.1,
        b1=jax.random.normal(ks[3], (LATENT,), jnp.float32) * 0.1,
        gamma=jnp.ones((LATENT,), jnp.float32),    # BatchNorm1d default init
        beta=jnp.zeros((LATENT,), jnp.float32),
        w2=jax.random.normal(ks[4], (FEAT, LATENT), jnp.float32) * 0.1,
        b2=jax.random.normal(ks[5], (FEAT,), jnp.float32) * 0.1,
        wfc=jax.random.normal(ks[6], (CLASSES, FEAT), jnp.float32) * 0.1,
        bfc=jax.random.normal(ks[7], (CLASSES,), jnp.float32) * 0.1,
    )
    # EstimatorCV.CoVariance is zeros in a fresh module; use a deterministic
    # symmetric PSD covariance so the correct_z path is actually exercised.
    b = jax.random.normal(ks[8], (CLASSES, FEAT, FEAT), jnp.float32) * 0.1
    cov = jnp.einsum("cij,ckj->cik", b, b)
    ratio = 0.5

    # block_n=8 at these toy shapes -> 3 batch tiles, exercising the grid,
    # batch padding, and the masked two-pass BatchNorm statistics.
    out = pred_y_with_s(s, y, ratio, params, cov, block_n=8)
    out = jax.block_until_ready(out)

    ref = _reference(s, y, ratio, params, cov)
    assert out.shape == (N, CLASSES), out.shape
    assert jnp.allclose(out, ref, rtol=1e-3, atol=1e-3), \
        float(jnp.max(jnp.abs(out - ref)))

    print("KERNEL_OK")
</pallas_src>

<mosaic_0001>
module attributes {stable_mosaic.version = 11 : i64} {
  func.func @_bn_stats_kernel(%arg0: i32, %arg1: memref<8x32xbf16, #tpu.memory_space<vmem>>, %arg2: memref<32x16xbf16, #tpu.memory_space<vmem>>, %arg3: memref<1x16xf32, #tpu.memory_space<vmem>>, %arg4: memref<1x16xf32, #tpu.memory_space<vmem>>, %arg5: memref<1x16xf32, #tpu.memory_space<vmem>>) attributes {dimension_semantics = [#tpu.dimension_semantics<arbitrary>], iteration_bounds = array<i64: 3>, scalar_prefetch = 0 : i64, scratch_operands = 0 : i64, tpu.core_type = #tpu.core_type<tc>, window_params = [{transform_indices = @transform_0, window_bounds = array<i64: 8, 32>}, {pipeline_mode = #tpu.pipeline_mode<synchronous>, transform_indices = @transform_1, window_bounds = array<i64: 32, 16>}, {pipeline_mode = #tpu.pipeline_mode<synchronous>, transform_indices = @transform_2, window_bounds = array<i64: 1, 16>}, {pipeline_mode = #tpu.pipeline_mode<synchronous>, transform_indices = @transform_3, window_bounds = array<i64: 1, 16>}, {pipeline_mode = #tpu.pipeline_mode<synchronous>, transform_indices = @transform_4, window_bounds = array<i64: 1, 16>}]} {
    %c0_i32 = arith.constant 0 : i32
    %0 = arith.cmpi eq, %arg0, %c0_i32 : i32
    %1 = arith.extui %0 : i1 to i32
    %c0_i32_0 = arith.constant 0 : i32
    %2 = arith.cmpi ne, %1, %c0_i32_0 : i32
    scf.if %2 {
      %cst_17 = arith.constant 0.000000e+00 : f32
      %28 = vector.broadcast %cst_17 : f32 to vector<1x16xf32>
      %c0_18 = arith.constant 0 : index
      %c0_19 = arith.constant 0 : index
      %29 = vector.load %arg4[%c0_18, %c0_19] : memref<1x16xf32, #tpu.memory_space<vmem>>, vector<1x16xf32>
      tpu.vector_store %arg4[%c0_18, %c0_19], %28 {strides = array<i32>} : memref<1x16xf32, #tpu.memory_space<vmem>>, vector<1x16xf32>,
      %cst_20 = arith.constant 0.000000e+00 : f32
      %30 = vector.broadcast %cst_20 : f32 to vector<1x16xf32>
      %c0_21 = arith.constant 0 : index
      %c0_22 = arith.constant 0 : index
      %31 = vector.load %arg5[%c0_21, %c0_22] : memref<1x16xf32, #tpu.memory_space<vmem>>, vector<1x16xf32>
      tpu.vector_store %arg5[%c0_21, %c0_22], %30 {strides = array<i32>} : memref<1x16xf32, #tpu.memory_space<vmem>>, vector<1x16xf32>,
    } else {
    }
    %c0 = arith.constant 0 : index
    %c0_1 = arith.constant 0 : index
    %3 = vector.load %arg1[%c0, %c0_1] : memref<8x32xbf16, #tpu.memory_space<vmem>>, vector<8x32xbf16>
    %c0_2 = arith.constant 0 : index
    %c0_3 = arith.constant 0 : index
    %4 = vector.load %arg2[%c0_2, %c0_3] : memref<32x16xbf16, #tpu.memory_space<vmem>>, vector<32x16xbf16>
    %cst = arith.constant dense<0.000000e+00> : vector<8x16xf32>
    %5 = tpu.matmul %3, %4, %cst {dimension_numbers = #tpu.dot_dimension_numbers<[1], [0], [0], [1], [0, 0, 1, 1], [], []>} : vector<8x32xbf16>, vector<32x16xbf16>, vector<8x16xf32> -> vector<8x16xf32>
    %c0_4 = arith.constant 0 : index
    %c0_5 = arith.constant 0 : index
    %6 = vector.load %arg3[%c0_4, %c0_5] : memref<1x16xf32, #tpu.memory_space<vmem>>, vector<1x16xf32>
    %7 = vector.broadcast %6 : vector<1x16xf32> to vector<8x16xf32>
    %8 = arith.addf %5, %7 : vector<8x16xf32>
    %9 = tpu.iota {dimensions = array<i32: 0>} : vector<8x16xi32>
    %c8_i32 = arith.constant 8 : i32
    %10 = arith.muli %arg0, %c8_i32 : i32
    %11 = vector.broadcast %10 : i32 to vector<8x16xi32>
    %12 = arith.addi %9, %11 : vector<8x16xi32>
    %c20_i32 = arith.constant 20 : i32
    %13 = vector.broadcast %c20_i32 : i32 to vector<8x16xi32>
    %14 = arith.cmpi slt, %12, %13 : vector<8x16xi32>
    %cst_6 = arith.constant 0.000000e+00 : f32
    %15 = vector.broadcast %cst_6 : f32 to vector<8x16xf32>
    %16 = arith.select %14, %8, %15 : vector<8x16xi1>, vector<8x16xf32>
    %c0_7 = arith.constant 0 : index
    %c0_8 = arith.constant 0 : index
    %17 = vector.load %arg4[%c0_7, %c0_8] : memref<1x16xf32, #tpu.memory_space<vmem>>, vector<1x16xf32>
    %cst_9 = arith.constant dense<0.000000e+00> : vector<16xf32>
    %18 = vector.multi_reduction <add>, %16, %cst_9 [0] : vector<8x16xf32> to vector<16xf32>
    %19 = vector.shape_cast %18 : vector<16xf32> to vector<1x16xf32>
    %20 = arith.addf %17, %19 : vector<1x16xf32>
    %c0_10 = arith.constant 0 : index
    %c0_11 = arith.constant 0 : index
    %21 = vector.load %arg4[%c0_10, %c0_11] : memref<1x16xf32, #tpu.memory_space<vmem>>, vector<1x16xf32>
    tpu.vector_store %arg4[%c0_10, %c0_11], %20 {strides = array<i32>} : memref<1x16xf32, #tpu.memory_space<vmem>>, vector<1x16xf32>,
    %c0_12 = arith.constant 0 : index
    %c0_13 = arith.constant 0 : index
    %22 = vector.load %arg5[%c0_12, %c0_13] : memref<1x16xf32, #tpu.memory_space<vmem>>, vector<1x16xf32>
    %23 = arith.mulf %16, %16 : vector<8x16xf32>
    %cst_14 = arith.constant dense<0.000000e+00> : vector<16xf32>
    %24 = vector.multi_reduction <add>, %23, %cst_14 [0] : vector<8x16xf32> to vector<16xf32>
    %25 = vector.shape_cast %24 : vector<16xf32> to vector<1x16xf32>
    %26 = arith.addf %22, %25 : vector<1x16xf32>
    %c0_15 = arith.constant 0 : index
    %c0_16 = arith.constant 0 : index
    %27 = vector.load %arg5[%c0_15, %c0_16] : memref<1x16xf32, #tpu.memory_space<vmem>>, vector<1x16xf32>
    tpu.vector_store %arg5[%c0_15, %c0_16], %26 {strides = array<i32>} : memref<1x16xf32, #tpu.memory_space<vmem>>, vector<1x16xf32>,
    return
  }
  func.func @transform_0(%arg0: i32) -> (i32, i32) {
    %c0_i32 = arith.constant 0 : i32
    %c0_i32_0 = arith.constant 0 : i32
    return %arg0, %c0_i32 : i32, i32
  }
  func.func @transform_1(%arg0: i32) -> (i32, i32) {
    %c0_i32 = arith.constant 0 : i32
    %c0_i32_0 = arith.constant 0 : i32
    %c0_i32_1 = arith.constant 0 : i32
    return %c0_i32, %c0_i32_0 : i32, i32
  }
  func.func @transform_2(%arg0: i32) -> (i32, i32) {
    %c0_i32 = arith.constant 0 : i32
    %c0_i32_0 = arith.constant 0 : i32
    %c0_i32_1 = arith.constant 0 : i32
    return %c0_i32, %c0_i32_0 : i32, i32
  }
  func.func @transform_3(%arg0: i32) -> (i32, i32) {
    %c0_i32 = arith.constant 0 : i32
    %c0_i32_0 = arith.constant 0 : i32
    %c0_i32_1 = arith.constant 0 : i32
    return %c0_i32, %c0_i32_0 : i32, i32
  }
  func.func @transform_4(%arg0: i32) -> (i32, i32) {
    %c0_i32 = arith.constant 0 : i32
    %c0_i32_0 = arith.constant 0 : i32
    %c0_i32_1 = arith.constant 0 : i32
    return %c0_i32, %c0_i32_0 : i32, i32
  }
}

</mosaic_0001>

<bundles_post_ra>
// kernel: tpu_custom_call.1
= control target key start
LH: loop header
LB: loop body
LE: loop exit
PB: predicated region body
PF: predicated region fallthrough
CT: control target
= control target key end

     0   :  { %10 = vsyncpa [#allocation3], 0  ;;  %s557_s0 = inlined_call_operand.vmem [shape: bf16[24,32], index: 0, kind: input, shape index: {}]   ;;  %s558_s1 = inlined_call_operand.vmem [shape: bf16[32,16], index: 1, kind: input, shape index: {}]   ;;  %s559_s2 = inlined_call_operand.vmem [shape: f32[1,16], index: 2, kind: input, shape index: {}]   ;;  %s560_s3 = inlined_call_operand.hbm [shape: f32[1,16], index: 3, kind: output, shape index: {0}]   ;;  %s561_s4 = inlined_call_operand.hbm [shape: f32[1,16], index: 4, kind: output, shape index: {1}]  }
   0x1   :  { %11 = vsyncpa [#allocation5], 0  ;;  %s503_s15 = smov 0  }
   0x2 LB: > { %s509_s16 = sadd.s32 4294967295, %s471_s15   ;;  %p357_p0 = scmp.ge.s32.totalorder %s471_s15, 1  ;;  %s471_s15 = sphi %s503_s15, %s17_s15  }
   0x3   : > { %p156_p1 = scmp.lt.s32.totalorder %s471_s15, 4 }
   0x5   : > { %p157_p2 = pnand %p357_p0, %p156_p1 }
   0x6   : > { %p176_p3 = scmp.lt.s32.totalorder (!%p157_p2), %s509_s16, 2  ;;  %p359_p4 = scmp.ne.s32.totalorder (!%p157_p2), %s509_s16, 0 }
   0x7   : > { %160 = sbr.rel (%p157_p2) target bundleno = 258 (0x102), region = 32 }
   0xc   : > { %s177_s17 = scalar_select %p176_p3, %s509_s16, 2 }
   0xd   : > { %184 = sbr.rel (%p359_p4) target bundleno = 20 (0x14), region = 36 }
   0xe   : > { %s358_s18 = sshll.u32 %s177_s17, 2 }
   0xf   : > { %s179_s21 = scalar_lea.vmem %s557_s0, %s358_s18 }
  0x12   : > { %vm185_vm0 = vcmask 122880   ;;  %v473_v0 = vmov 0.0  }
  0x13   : > { %186 = vst.msk [vmem:[#allocation2] sm:$0x1] %vm185_vm0, %v473_v0  ;;  %187 = vst.msk [vmem:[#allocation4] sm:$0x1] %vm185_vm0, %v473_v0 }
  0x14 PF: > { %v407_v1 = vld [vmem:[%s558_s1 + $0x8] sm:$0xff]   ;;  %v474_v2 = vmov 0.0   ;;  %v408_v3 = vld [vmem:[%s558_s1] sm:$0xff]   ;;  %vm475_vm1 = vmmov 0   ;;  %vm212_vm2 = vcmask 261120   ;;  %v256_v5 = vlaneseq  ;;  %s364_s26 = sshll.u32 %s509_s16, 3 }
  0x15   : > { %374 = vmatprep.subr.bf16.mxu0 %v474_v2  ;;  %378 = vmatprep.mubr.msk.bf16.mxu0 %vm475_vm1, %v474_v2  ;;  %v188_v4 = vld [vmem:[%s179_s21] sm:$0xf]  ;;  %v259_v7 = vstv %s364_s26  ;;  %vm264_vm4 = vcmask 130048   ;;  %s476_s29 = smov [#allocation2]   ;;  %vm273_vm5 = vcmask 122880   ;;  %p390_p5 = scmp.eq.s32.totalorder %s509_s16, 2 }
  0x16   : > { %375 = vmatpush3.bf16.msra.mxu0 %v407_v1  ;;  %v257_v6 = vshrl.u32 %v256_v5, 7  ;;  %v360_v9 = vld [vmem:[%s559_s2] ss:$0 sm:$0xff]  ;;  %s293_s30 = sshll.u32 %s476_s29, 4  ;;  %s477_s5 = smov [#allocation4]   ;;  %s294_s30 = int_to_ptr.vmem [resolvable:$true] %s293_s30 }
  0x17   : > { %376 = vmatprep.subr.bf16.mxu0 %v474_v2  ;;  %s304_s6 = sshll.u32 %s477_s5, 4  ;;  %s409_s7 = scalar_lea.vmem %s294_s30, 16  ;;  %s305_s6 = int_to_ptr.vmem [resolvable:$true] %s304_s6 }
  0x18   : > { %v260_v8 = vadd.s32 %v259_v7, %v257_v6  ;;  %p410_p6 = scmp.ne.s32.totalorder %s294_s30, %s409_s7  ;;  %s415_s8 = scalar_lea.vmem %s294_s30, 32 }
  0x19   : > { %p416_p9 = scmp.lt.s32.totalorder %s294_s30, %s294_s30  ;;  %p417_p10 = scmp.lt.s32.totalorder %s415_s8, %s409_s7 }
  0x1a   : > { %377 = vmatpush3.bf16.msra.mxu0 %v408_v3  ;;  %vm261_vm3 = vcmp.lt.s32.totalorder %v260_v8, 20  ;;  %v263_v28 = vld [vmem:[#allocation2] sm:$0x1]  ;;  %v275_v31 = vld [vmem:[#allocation4] sm:$0x1]  ;;  %p411_p7 = pnand %p410_p6, %p390_p5 }
  0x1b   : > { %p418_p11 = por %p417_p10, %p416_p9 }
  0x1c   : > { %p412_p8 = pneg %p411_p7 }
  0x1d   : > { %379 = vmatmul.mubr.msk.bf16.vlgmr.msra.gmra.mxu0 %vm212_vm2, %v188_v4 }
  0x1e   : > { %p419_p12 = pnand %p418_p11, %p412_p8 }
  0xdd   : > { %v250_v10 = vpop.f32.mrf.mxu0 }
  0xde   : > { %v251_v11 = vadd.f32 %v360_v9, %v250_v10 }
  0xdf   : > { %v380_v12 = vpop.f32.mrf.mxu0 }
  0xe0   : > { %v262_v13 = vsel %vm261_vm3, %v251_v11, 0.0 }
  0xe1   : > { %v265_v14 = vsel %vm264_vm4, %v262_v13, 0.0  ;;  %v276_v15 = vmul.f32 %v262_v13, %v262_v13  ;;  %v253_v16 = vpop.f32.mrf.mxu0 }
  0xe2   : > { %v266_v17 = vrot.slane %v265_v14, 4 }
  0xe3   : > { %v277_v18 = vsel %vm264_vm4, %v276_v15, 0.0  ;;  %v381_v19 = vpop.f32.mrf.mxu0 }
  0xe4   : > { %v267_v20 = vadd.f32 %v266_v17, %v265_v14  ;;  %v278_v21 = vrot.slane %v277_v18, 4 }
  0xe6   : > { %v268_v22 = vrot.slane %v267_v20, 2  ;;  %v279_v23 = vadd.f32 %v278_v21, %v277_v18 }
  0xe8   : > { %v269_v24 = vadd.f32 %v268_v22, %v267_v20  ;;  %v280_v25 = vrot.slane %v279_v23, 2 }
  0xea   : > { %v270_v26 = vrot.slane %v269_v24, 1  ;;  %v281_v27 = vadd.f32 %v280_v25, %v279_v23 }
  0xec   : > { %v271_v29 = vadd.f32 %v270_v26, %v269_v24  ;;  %v282_v30 = vrot.slane %v281_v27, 1 }
  0xee   : > { %v272_v32 = vadd.f32 %v271_v29, %v263_v28  ;;  %v283_v33 = vadd.f32 %v282_v30, %v281_v27 }
  0xf0   : > { %274 = vst.msk [vmem:[#allocation2] sm:$0x1] %vm273_vm5, %v272_v32  ;;  %v284_v34 = vadd.f32 %v283_v33, %v275_v31 }
  0xf1   : > { %422 = shalt.err (!%p419_p12)
}
  0xf2   : > { %383 = dma.vmem_to_hbm [thread:$0]  (%p390_p5), %s294_s30, 16, %s560_s3, [#allocation3]   ;;  %285 = vst.msk [vmem:[#allocation4] sm:$0x1] %vm273_vm5, %v284_v34 }
  0xf3   : > { %s433_s11 = scalar_lea.vmem %s305_s6, 16  ;;  %s439_s12 = scalar_lea.vmem %s305_s6, 32 }
  0xf4   : > { %p434_p13 = scmp.ne.s32.totalorder %s305_s6, %s433_s11  ;;  %p440_p2 = scmp.lt.s32.totalorder %s305_s6, %s305_s6 }
  0xf5   : > { %p441_p3 = scmp.lt.s32.totalorder %s439_s12, %s433_s11 }
  0xf6   : > { %p435_p0 = pnand %p434_p13, %p390_p5 }
  0xf7   : > { %p442_p4 = por %p441_p3, %p440_p2 }
  0xf8   : > { %p436_p1 = pneg %p435_p0 }
  0xfa   : > { %p443_p6 = pnand %p442_p4, %p436_p1 }
  0xfc   : > { %446 = shalt.err (!%p443_p6)
}
  0xfd   : > { %385 = dma.vmem_to_hbm [thread:$0]  (%p390_p5), %s305_s6, 16, %s561_s4, [#allocation5]  }
  0xfe   : > { %462 = dma.done.wait (%p390_p5), [#allocation3], 16  }
  0xff   : > { %464 = vsyncadd (%p390_p5), [#allocation3], 4294967280 }
 0x100   : > { %466 = dma.done.wait (%p390_p5), [#allocation5], 16  }
 0x101   : > { %468 = vsyncadd (%p390_p5), [#allocation5], 4294967280 }
 0x102 PF: > { %s17_s15 = sadd.s32 1, %s471_s15  }
 0x103   : > { %p14_p7 = scmp.ge.s32.totalorder %s17_s15, 5  }
 0x105   :  { %16 = sbr.rel (!%p14_p7) target bundleno = 2 (0x2), region = 71 }
 0x10a   :  { %321 = vsyncpa [#allocation3], 1 }
 0x10b   :  { %323 = vsyncpa [#allocation3 + $0x1], 1 }
 0x10c   :  { %324 = vsyncpa [#allocation5], 1 }

</bundles_post_ra>
